<compile_context>
chip_gen: v7x
topology: tpu7x:2x2x1
jax: 0.10.0
libtpu: 0.0.40
codegen_flags: <defaults>
</compile_context>

<pallas_src>
from functools import partial

import jax
import jax.numpy as jnp
from jax.experimental import pallas as pl
from jax.experimental.pallas import tpu as pltpu


def _conv_relu_kernel(x_ref, w_ref, b_ref, o_ref, acc_ref, *, row_stride):
    # x_ref:   (1, Hrows*Wp, Kp)  kw-folded, channel-padded, spatially-flattened
    #                             input for one batch element (resident per b).
    # w_ref:   (KH, Kp, Cp)       weight, K = KW*Cin padded to 128, Cout padded.
    # b_ref:   (1, Cp)            bias (f32).
    # o_ref:   (1, M, Cp)         output tile, M = TH * Wp rows.
    # acc_ref: (M, Cp) f32        VMEM scratch accumulator.
    KH = w_ref.shape[0]
    M = o_ref.shape[1]

    base = pl.program_id(1) * M  # first flattened input row of this H-tile
    for kh in range(KH):         # static 3-tap loop -> unrolled
        start = pl.multiple_of(base + kh * row_stride, 8)
        patch = x_ref[0, pl.ds(start, M), :]                 # (M, Kp), aligned
        tap = jnp.dot(patch, w_ref[kh],
                      preferred_element_type=jnp.float32)    # MXU, f32 acc
        if kh == 0:
            acc_ref[...] = tap
        else:
            acc_ref[...] += tap

    out = jnp.maximum(acc_ref[...] + b_ref[...], 0.0)        # bias + ReLU fused
    o_ref[...] = out[None].astype(o_ref.dtype)               # lane-dense store


def same_block2d(x_nchw, weight_oihw, bias, *, padding=1, tile_h=8):
    """Forward pass of SameBlock2d (conv k x k, pad, groups=1, then ReLU).

    x_nchw: (B, Cin, H, W) PyTorch-style input.
    weight_oihw: (Cout, Cin, KH, KW); bias: (Cout,).
    """
    B, Cin, H, W = x_nchw.shape
    Cout, Cin_w, KH, KW = weight_oihw.shape
    assert Cin_w == Cin, "groups=1 only"
    P = padding
    Ho = H + 2 * P - KH + 1
    Wo = W + 2 * P - KW + 1
    assert Ho > 0 and Wo > 0

    LANE, SUB = 128, 8
    Kdim = KW * Cin
    Kp = pl.cdiv(Kdim, LANE) * LANE           # contraction dim, lane-padded
    Cp = pl.cdiv(Cout, LANE) * LANE           # output channels, lane-padded
    TH = max(1, min(tile_h, Ho))              # output rows per grid step
    Ho_pad = pl.cdiv(Ho, TH) * TH
    Wp = pl.cdiv(Wo, SUB) * SUB               # sublane-aligned row width
    Hrows = Ho_pad + KH - 1                   # input rows needed incl. halo
    dt = x_nchw.dtype

    # ---- layout glue (plain JAX, not the hot path) ----
    x = jnp.transpose(x_nchw, (0, 2, 3, 1))                       # NHWC
    xpad = jnp.pad(x, ((0, 0), (P, P), (P, P), (0, 0)))           # (B,H+2P,W+2P,Cin)
    # kw-fold: last dim becomes KW*Cin (kw-major blocks of Cin)
    cols = [xpad[:, :, kw:kw + Wo, :] for kw in range(KW)]
    xc = jnp.concatenate(cols, axis=-1)                           # (B,H+2P,Wo,KW*Cin)
    xc = jnp.pad(xc, ((0, 0),
                      (0, Hrows - (H + 2 * P)),
                      (0, Wp - Wo),
                      (0, Kp - Kdim)))
    xc = xc.reshape(B, Hrows * Wp, Kp)                            # flatten spatial

    # weight (Cout,Cin,KH,KW) -> (KH, KW*Cin, Cout), padded to (KH, Kp, Cp)
    wr = jnp.transpose(weight_oihw, (2, 3, 1, 0)).reshape(KH, Kdim, Cout)
    wr = jnp.pad(wr, ((0, 0), (0, Kp - Kdim), (0, Cp - Cout)))
    b2 = jnp.pad(bias.astype(jnp.float32), (0, Cp - Cout)).reshape(1, Cp)

    n_h = Ho_pad // TH
    M = TH * Wp

    out_flat = pl.pallas_call(
        partial(_conv_relu_kernel, row_stride=Wp),
        out_shape=jax.ShapeDtypeStruct((B, Ho_pad * Wp, Cp), dt),
        grid=(B, n_h),
        in_specs=[
            # whole (padded, folded) image: resident across the H-tile axis
            pl.BlockSpec((1, Hrows * Wp, Kp), lambda b, h: (b, 0, 0)),
            # weight / bias: constant index_map -> DMA'd once, stay in VMEM
            pl.BlockSpec((KH, Kp, Cp), lambda b, h: (0, 0, 0)),
            pl.BlockSpec((1, Cp), lambda b, h: (0, 0)),
        ],
        out_specs=pl.BlockSpec((1, M, Cp), lambda b, h: (b, h, 0)),
        scratch_shapes=[pltpu.VMEM((M, Cp), jnp.float32)],
        compiler_params=pltpu.CompilerParams(
            dimension_semantics=("parallel", "parallel")),
    )(xc, wr, b2)

    out = out_flat.reshape(B, Ho_pad, Wp, Cp)[:, :Ho, :Wo, :Cout]
    return jnp.transpose(out, (0, 3, 1, 2))                       # back to NCHW


def _reference(x_nchw, weight_oihw, bias, padding=1):
    out = jax.lax.conv_general_dilated(
        x_nchw, weight_oihw,
        window_strides=(1, 1),
        padding=[(padding, padding), (padding, padding)],
        dimension_numbers=("NCHW", "OIHW", "NCHW"))
    out = out + bias[None, :, None, None]
    return jnp.maximum(out, 0.0)


if __name__ == "__main__":
    key = jax.random.PRNGKey(0)
    k_x, k_w, k_b = jax.random.split(key, 3)

    B, Cin, Cout, H, W, K = 2, 4, 8, 16, 16, 3

    x = jax.random.normal(k_x, (B, Cin, H, W), jnp.float32)
    # PyTorch Conv2d weight shape: (Cout, Cin, K, K)
    weight = jax.random.normal(k_w, (Cout, Cin, K, K), jnp.float32) * 0.1
    bias = jax.random.normal(k_b, (Cout,), jnp.float32) * 0.1

    out = same_block2d(x, weight, bias, padding=1, tile_h=8)
    out = jax.block_until_ready(out)

    ref = _reference(x, weight, bias, padding=1)
    assert out.shape == (B, Cout, H, W)
    assert jnp.allclose(out, ref, atol=1e-3, rtol=1e-3), "mismatch vs JAX reference"

    print("KERNEL_OK")
</pallas_src>

<mosaic_0001>
module attributes {stable_mosaic.version = 11 : i64} {
  func.func @_conv_relu_kernel(%arg0: i32, %arg1: i32, %arg2: memref<1x288x128xf32, #tpu.memory_space<vmem>>, %arg3: memref<3x128x128xf32, #tpu.memory_space<vmem>>, %arg4: memref<1x128xf32, #tpu.memory_space<vmem>>, %arg5: memref<1x128x128xf32, #tpu.memory_space<vmem>>, %arg6: memref<128x128xf32, #tpu.memory_space<vmem>>) attributes {dimension_semantics = [#tpu.dimension_semantics<parallel>, #tpu.dimension_semantics<parallel>], iteration_bounds = array<i64: 2, 2>, scalar_prefetch = 0 : i64, scratch_operands = 1 : i64, tpu.core_type = #tpu.core_type<tc>, window_params = [{transform_indices = @transform_0, window_bounds = array<i64: 1, 288, 128>}, {pipeline_mode = #tpu.pipeline_mode<synchronous>, transform_indices = @transform_1, window_bounds = array<i64: 3, 128, 128>}, {pipeline_mode = #tpu.pipeline_mode<synchronous>, transform_indices = @transform_2, window_bounds = array<i64: 1, 128>}, {transform_indices = @transform_3, window_bounds = array<i64: 1, 128, 128>}]} {
    %c128_i32 = arith.constant 128 : i32
    %0 = arith.muli %arg1, %c128_i32 : i32
    %c0_i32 = arith.constant 0 : i32
    %1 = arith.addi %0, %c0_i32 : i32
    %2 = tpu.assume_multiple %1, 8 : i32
    %c0 = arith.constant 0 : index
    %3 = arith.index_cast %2 : i32 to index
    %c0_0 = arith.constant 0 : index
    %4 = vector.load %arg2[%c0, %3, %c0_0] : memref<1x288x128xf32, #tpu.memory_space<vmem>>, vector<1x128x128xf32>
    %5 = vector.shape_cast %4 : vector<1x128x128xf32> to vector<128x128xf32>
    %c0_1 = arith.constant 0 : index
    %c0_2 = arith.constant 0 : index
    %c0_3 = arith.constant 0 : index
    %6 = vector.load %arg3[%c0_1, %c0_2, %c0_3] : memref<3x128x128xf32, #tpu.memory_space<vmem>>, vector<1x128x128xf32>
    %7 = vector.shape_cast %6 : vector<1x128x128xf32> to vector<128x128xf32>
    %cst = arith.constant dense<0.000000e+00> : vector<128x128xf32>
    %8 = tpu.matmul %5, %7, %cst {dimension_numbers = #tpu.dot_dimension_numbers<[1], [0], [0], [1], [0, 0, 1, 1], [], []>} : vector<128x128xf32>, vector<128x128xf32>, vector<128x128xf32> -> vector<128x128xf32>
    %c0_4 = arith.constant 0 : index
    %c0_5 = arith.constant 0 : index
    %9 = vector.load %arg6[%c0_4, %c0_5] : memref<128x128xf32, #tpu.memory_space<vmem>>, vector<128x128xf32>
    tpu.vector_store %arg6[%c0_4, %c0_5], %8 {strides = array<i32>} : memref<128x128xf32, #tpu.memory_space<vmem>>, vector<128x128xf32>,
    %c16_i32 = arith.constant 16 : i32
    %10 = arith.addi %0, %c16_i32 : i32
    %11 = tpu.assume_multiple %10, 8 : i32
    %c0_6 = arith.constant 0 : index
    %12 = arith.index_cast %11 : i32 to index
    %c0_7 = arith.constant 0 : index
    %13 = vector.load %arg2[%c0_6, %12, %c0_7] : memref<1x288x128xf32, #tpu.memory_space<vmem>>, vector<1x128x128xf32>
    %14 = vector.shape_cast %13 : vector<1x128x128xf32> to vector<128x128xf32>
    %c1 = arith.constant 1 : index
    %c0_8 = arith.constant 0 : index
    %c0_9 = arith.constant 0 : index
    %15 = vector.load %arg3[%c1, %c0_8, %c0_9] : memref<3x128x128xf32, #tpu.memory_space<vmem>>, vector<1x128x128xf32>
    %16 = vector.shape_cast %15 : vector<1x128x128xf32> to vector<128x128xf32>
    %cst_10 = arith.constant dense<0.000000e+00> : vector<128x128xf32>
    %17 = tpu.matmul %14, %16, %cst_10 {dimension_numbers = #tpu.dot_dimension_numbers<[1], [0], [0], [1], [0, 0, 1, 1], [], []>} : vector<128x128xf32>, vector<128x128xf32>, vector<128x128xf32> -> vector<128x128xf32>
    %c0_11 = arith.constant 0 : index
    %c0_12 = arith.constant 0 : index
    %18 = vector.load %arg6[%c0_11, %c0_12] : memref<128x128xf32, #tpu.memory_space<vmem>>, vector<128x128xf32>
    %19 = arith.addf %18, %17 : vector<128x128xf32>
    %c0_13 = arith.constant 0 : index
    %c0_14 = arith.constant 0 : index
    %20 = vector.load %arg6[%c0_13, %c0_14] : memref<128x128xf32, #tpu.memory_space<vmem>>, vector<128x128xf32>
    tpu.vector_store %arg6[%c0_13, %c0_14], %19 {strides = array<i32>} : memref<128x128xf32, #tpu.memory_space<vmem>>, vector<128x128xf32>,
    %c32_i32 = arith.constant 32 : i32
    %21 = arith.addi %0, %c32_i32 : i32
    %22 = tpu.assume_multiple %21, 8 : i32
    %c0_15 = arith.constant 0 : index
    %23 = arith.index_cast %22 : i32 to index
    %c0_16 = arith.constant 0 : index
    %24 = vector.load %arg2[%c0_15, %23, %c0_16] : memref<1x288x128xf32, #tpu.memory_space<vmem>>, vector<1x128x128xf32>
    %25 = vector.shape_cast %24 : vector<1x128x128xf32> to vector<128x128xf32>
    %c2 = arith.constant 2 : index
    %c0_17 = arith.constant 0 : index
    %c0_18 = arith.constant 0 : index
    %26 = vector.load %arg3[%c2, %c0_17, %c0_18] : memref<3x128x128xf32, #tpu.memory_space<vmem>>, vector<1x128x128xf32>
    %27 = vector.shape_cast %26 : vector<1x128x128xf32> to vector<128x128xf32>
    %cst_19 = arith.constant dense<0.000000e+00> : vector<128x128xf32>
    %28 = tpu.matmul %25, %27, %cst_19 {dimension_numbers = #tpu.dot_dimension_numbers<[1], [0], [0], [1], [0, 0, 1, 1], [], []>} : vector<128x128xf32>, vector<128x128xf32>, vector<128x128xf32> -> vector<128x128xf32>
    %c0_20 = arith.constant 0 : index
    %c0_21 = arith.constant 0 : index
    %29 = vector.load %arg6[%c0_20, %c0_21] : memref<128x128xf32, #tpu.memory_space<vmem>>, vector<128x128xf32>
    %30 = arith.addf %29, %28 : vector<128x128xf32>
    %c0_22 = arith.constant 0 : index
    %c0_23 = arith.constant 0 : index
    %31 = vector.load %arg6[%c0_22, %c0_23] : memref<128x128xf32, #tpu.memory_space<vmem>>, vector<128x128xf32>
    tpu.vector_store %arg6[%c0_22, %c0_23], %30 {strides = array<i32>} : memref<128x128xf32, #tpu.memory_space<vmem>>, vector<128x128xf32>,
    %c0_24 = arith.constant 0 : index
    %c0_25 = arith.constant 0 : index
    %32 = vector.load %arg6[%c0_24, %c0_25] : memref<128x128xf32, #tpu.memory_space<vmem>>, vector<128x128xf32>
    %c0_26 = arith.constant 0 : index
    %c0_27 = arith.constant 0 : index
    %33 = vector.load %arg4[%c0_26, %c0_27] : memref<1x128xf32, #tpu.memory_space<vmem>>, vector<1x128xf32>
    %34 = vector.broadcast %33 : vector<1x128xf32> to vector<128x128xf32>
    %35 = arith.addf %32, %34 : vector<128x128xf32>
    %cst_28 = arith.constant 0.000000e+00 : f32
    %36 = vector.broadcast %cst_28 : f32 to vector<128x128xf32>
    %37 = arith.maximumf %35, %36 : vector<128x128xf32>
    %38 = vector.shape_cast %37 : vector<128x128xf32> to vector<1x128x128xf32>
    %c0_29 = arith.constant 0 : index
    %c0_30 = arith.constant 0 : index
    %c0_31 = arith.constant 0 : index
    %39 = vector.load %arg5[%c0_29, %c0_30, %c0_31] : memref<1x128x128xf32, #tpu.memory_space<vmem>>, vector<1x128x128xf32>
    tpu.vector_store %arg5[%c0_29, %c0_30, %c0_31], %38 {strides = array<i32>} : memref<1x128x128xf32, #tpu.memory_space<vmem>>, vector<1x128x128xf32>,
    return
  }
  func.func @transform_0(%arg0: i32, %arg1: i32) -> (i32, i32, i32) {
    %c0_i32 = arith.constant 0 : i32
    %c0_i32_0 = arith.constant 0 : i32
    %c0_i32_1 = arith.constant 0 : i32
    return %arg0, %c0_i32, %c0_i32_0 : i32, i32, i32
  }
  func.func @transform_1(%arg0: i32, %arg1: i32) -> (i32, i32, i32) {
    %c0_i32 = arith.constant 0 : i32
    %c0_i32_0 = arith.constant 0 : i32
    %c0_i32_1 = arith.constant 0 : i32
    %c0_i32_2 = arith.constant 0 : i32
    return %c0_i32, %c0_i32_0, %c0_i32_1 : i32, i32, i32
  }
  func.func @transform_2(%arg0: i32, %arg1: i32) -> (i32, i32) {
    %c0_i32 = arith.constant 0 : i32
    %c0_i32_0 = arith.constant 0 : i32
    %c0_i32_1 = arith.constant 0 : i32
    return %c0_i32, %c0_i32_0 : i32, i32
  }
  func.func @transform_3(%arg0: i32, %arg1: i32) -> (i32, i32, i32) {
    %c0_i32 = arith.constant 0 : i32
    %c0_i32_0 = arith.constant 0 : i32
    return %arg0, %arg1, %c0_i32 : i32, i32, i32
  }
}

</mosaic_0001>

<bundles_post_ra>
// kernel: tpu_custom_call.1
= control target key start
LH: loop header
LB: loop body
LE: loop exit
PB: predicated region body
PF: predicated region fallthrough
CT: control target
= control target key end

     0   :  { %s2249_s0 = inlined_call_operand.hbm [shape: f32[2,288,128], index: 0, kind: input, shape index: {}]   ;;  %s2250_s1 = inlined_call_operand.hbm [shape: f32[3,128,128], index: 1, kind: input, shape index: {}]   ;;  %s2251_s2 = inlined_call_operand.vmem [shape: f32[1,128], index: 2, kind: input, shape index: {}]   ;;  %s2252_s3 = inlined_call_operand.hbm [shape: f32[2,256,128], index: 3, kind: output, shape index: {}]  }
   0x1   :  { %2265 = sst [smem:[#allocation17_spill]] %s2250_s1 }
   0x2   :  { %8 = vsyncpa [#allocation4], 0 }
   0x3   :  { %10 = vsyncpa [#allocation4 + $0x1], 0 }
   0x4   :  { %11 = vsyncpa [#allocation7], 0 }
   0x5   :  { %12 = vsyncpa [#allocation5], 0 }
   0x6   :  { %14 = vsyncpa [#allocation5 + $0x1], 0  ;;  %s1854_s12 = smov 0   ;;  %s1856_s13 = smov 0  }
   0x7   :  { %s1858_s14 = smov 0   ;;  %s1860_s15 = smov 0  }
   0x8   :  { %s1862_s16 = smov 0   ;;  %s1864_s17 = smov 0  }
   0x9   :  { %s1866_s18 = smov 0   ;;  %s1868_s19 = smov 0  }
   0xa   :  { %s1870_s20 = smov 0   ;;  %s1872_s21 = smov 0  }
   0xb   :  { %s1874_s22 = smov 0  }
   0xc LB: > { %2266 = sst [smem:[#allocation12_spill]] %s1785_s12  ;;  %s1062_s23 = sadd.s32 4294967295, %s1825_s22   ;;  %s1825_s22 = sphi %s1874_s22, %s20_s22   ;;  %s1821_s21 = sphi %s1872_s21, %s2299_s21   ;;  %s1817_s20 = sphi %s1870_s20, %s2290_s20   ;;  %s1813_s19 = sphi %s1868_s19, %s2298_s19   ;;  %s1809_s18 = sphi %s1866_s18, %s2289_s18   ;;  %s1805_s17 = sphi %s1864_s17, %s2297_s17   ;;  %s1801_s16 = sphi %s1862_s16, %s2296_s16   ;;  %s1797_s15 = sphi %s1860_s15, %s2295_s15   ;;  %s1793_s14 = sphi %s1858_s14, %s2294_s14   ;;  %s1789_s13 = sphi %s1856_s13, %s2293_s13   ;;  %s1785_s12 = sphi %s1854_s12, %s2292_s12  }
   0xd   : > { %2267 = sst [smem:[#allocation13_spill]] %s1817_s20  ;;  %s1063_s24 = sadd.s32 4294967294, %s1825_s22  }
   0xe   : > { %p52_p0 = scmp.ne.s32.totalorder %s1801_s16, %s1797_s15  ;;  %p1910_p1 = scmp.eq.s32.totalorder %s1062_s23, 0 }
   0xf   : > { %s109_s26 = sadd.s32 1, %s1793_s14  ;;  %p119_p2 = scmp.ne.s32.totalorder %s1793_s14, %s1789_s13 }
  0x10   : > { %s2268_s25 = scalar_select %p1910_p1, 1, 0 }
  0x11   : > { %p1919_p3 = por %p1910_p1, %p52_p0  ;;  %p120_p4 = scmp.eq.s32.totalorder %s1062_s23, 3 }
  0x12   : > { %p125_p5 = scmp.ne.s32.totalorder %s1789_s13, %s1785_s12  ;;  %p126_p6 = scmp.eq.s32.totalorder %s1063_s24, 3 }
  0x13   : > { %s2269_s27 = scalar_select %p1919_p3, 1, 0 }
  0x14   : > { %p1925_p7 = por %p120_p4, %p119_p2  ;;  %p1064_p8 = scmp.ge.s32.totalorder %s1825_s22, 1 }
  0x15   : > { %p1930_p9 = por %p126_p6, %p125_p5  ;;  %p133_p10 = scmp.lt.s32.totalorder %s1825_s22, 5 }
  0x16   : > { %s2270_s28 = scalar_select %p1925_p7, 1, 0 }
  0x17   : > { %s2271_s29 = scalar_select %p1930_p9, 1, 0 }
  0x18   : > { %p1935_p11 = pnand %p1064_p8, %p133_p10  ;;  %s1827_s4 = smov [#allocation6]  }
  0x19   : > { %2272 = sst [smem:[#allocation14_spill]] %s2271_s29  ;;  %s145_s5 = sshll.u32 %s1827_s4, 4  ;;  %s146_s5 = int_to_ptr.vmem [resolvable:$true] %s145_s5 }
  0x1a   : > { %s2273_s30 = scalar_select %p1935_p11, 1, 0 }
  0x1b   : > { %p1532_p12 = pneg %p1935_p11  ;;  %s2275_s1 = sld [smem:[#allocation17_spill]] }
  0x1d   : > { %p1943_p13 = pnand %p1532_p12, %p1910_p1 }
  0x1f   : > { %p1643_p2 = pneg %p1943_p13 }
  0x21   : > { %s1641_s9 = scalar_lea.hbm %s2275_s1, 6144 }
  0x22   : > { %p1642_p0 = scmp.ne.s32.totalorder %s2275_s1, %s1641_s9  ;;  %p1648_p6 = scmp.lt.u32.totalorder %s1641_s9, %s2275_s1 }
  0x24   : > { %p1644_p4 = pnand %p1643_p2, %p1642_p0 }
  0x26   : > { %p1645_p5 = pneg %p1644_p4 }
  0x28   : > { %p1650_p8 = pnand %p1648_p6, %p1645_p5 }
  0x2a   : > { %1653 = shalt.err (!%p1650_p8)
}
  0x2b   : > { %s1654_s24 = scalar_lea.vmem %s146_s5, 6144  ;;  %p1662_p7 = scmp.lt.s32.totalorder %s146_s5, %s146_s5 }
  0x2c   : > { %p1655_p10 = scmp.ne.s32.totalorder %s146_s5, %s1654_s24  ;;  %p1663_p1 = scmp.lt.s32.totalorder %s1654_s24, %s1654_s24 }
  0x2e   : > { %p1657_p12 = pnand %p1655_p10, %p1643_p2  ;;  %p1664_p3 = por %p1663_p1, %p1662_p7 }
  0x30   : > { %p1658_p9 = pneg %p1657_p12 }
  0x32   : > { %p1665_p11 = pnand %p1664_p3, %p1658_p9 }
  0x34   : > { %1668 = shalt.err (!%p1665_p11)
}
  0x35   : > { %s2258_s4 = smov 128   ;;  %s2259_s7 = smov 8  }
  0x36   : > { %1535 = dma.hbm_to_vmem [thread:$0]  (!%p1943_p13), %s2275_s1, 6144, %s146_s5, [#allocation7], %s2258_s4, %s2258_s4, %s2259_s7  }
  0x37   : > { %s29_s10 = sadd.s32 1, %s1817_s20  ;;  %s32_s11 = sadd.s32 1, %s1821_s21 }
  0x38   : > { %p30_p1 = scmp.ge.s32.totalorder %s29_s10, 2  ;;  %s39_s15 = sadd.s32 1, %s1805_s17 }
  0x39   : > { %p46_p3 = scmp.ne.s32.totalorder %s1805_s17, %s1801_s16  ;;  %p47_p7 = scmp.eq.s32.totalorder %s1825_s22, 0 }
  0x3a   : > { %s2301_s10 = smov (%p30_p1, %s29_s10), 0  ;;  %s2303_s11 = smov (!%p30_p1, %s32_s11), %s1821_s21 }
  0x3b   : > { %2276 = sst [smem:[#allocation15_spill]] %s2301_s10  ;;  %s105_s6 = ssub.s32 %s1817_s20, %s2301_s10 }
  0x3c   : > { %p34_p9 = scmp.ge.s32.totalorder %s2303_s11, 2  ;;  %p1545_p11 = scmp.lt.s32.totalorder %s1825_s22, 4 }
  0x3d   : > { %p1978_p13 = por %p47_p7, %p46_p3  ;;  %s162_s23 = sand.u32 1, %s1805_s17  }
  0x3e   : > { %s2305_s11 = smov (%p34_p9, %s2303_s11), 0  ;;  %s1521_s24 = smul.u32 288, %s162_s23 }
  0x3f   : > { %2278 = sst [smem:[#allocation16_spill]] %s2305_s11  ;;  %s36_s8 = ssub.s32 %s1821_s21, %s2305_s11 }
  0x40   : > { %s1522_s9 = smul.u32 4608, %s1821_s21  ;;  %p37_p0 = scmp.eq.s32.totalorder %s36_s8, 0 }
  0x41   : > { %s106_s4 = sor.u32 %s105_s6, %s36_s8  ;;  %s166_s12 = scalar_lea.vmem [#allocation3], %s1521_s24 }
  0x42   : > { %p107_p2 = scmp.eq.s32.totalorder %s106_s4, 0  ;;  %s1999_s29 = scalar_lea.hbm %s2249_s0, %s1522_s9 }
  0x43   : > { %s1989_s7 = scalar_select %p37_p0, %s1805_s17, %s39_s15  }
  0x44   : > { %s1994_s1 = scalar_select %p107_p2, %s1793_s14, %s109_s26  }
  0x45   : > { %s173_s11 = sshll.u32 %s166_s12, 4  ;;  %p2007_p4 = pnand %p1545_p11, %p1978_p13  ;;  %s2001_s11 = int_to_ptr.vmem [resolvable:$true] %s173_s11 }
  0x46   : > { %s2011_s26 = scalar_lea.sflag [#allocation4], %s162_s23  ;;  %s1669_s20 = scalar_lea.hbm %s1999_s29, 4608 }
  0x47   : > { %p1670_p5 = scmp.ne.s32.totalorder %s1999_s29, %s1669_s20  ;;  %p1671_p6 = pneg %p2007_p4 }
  0x48   : > { %s1674_s15 = scalar_lea.hbm %s2249_s0, 9216  ;;  %p1675_p12 = scmp.lt.u32.totalorder %s1999_s29, %s2249_s0 }
  0x49   : > { %p1672_p8 = pnand %p1671_p6, %p1670_p5  ;;  %p1676_p1 = scmp.lt.u32.totalorder %s1674_s15, %s1669_s20 }
  0x4a   : > { %p1678_p7 = scmp.lt.u32.totalorder %s1669_s20, %s1999_s29 }
  0x4b   : > { %p1673_p10 = pneg %p1672_p8  ;;  %p1677_p3 = por %p1676_p1, %p1675_p12 }
  0x4d   : > { %p1679_p9 = por %p1678_p7, %p1677_p3 }
  0x4f   : > { %p1680_p11 = pnand %p1679_p9, %p1673_p10 }
  0x51   : > { %1683 = shalt.err (!%p1680_p11)
}
  0x52   : > { %s1684_s23 = scalar_lea.vmem %s2001_s11, 4608  ;;  %s1830_s24 = smov [#allocation3]  }
  0x53   : > { %p1685_p13 = scmp.ne.s32.totalorder %s2001_s11, %s1684_s23  ;;  %s1689_s8 = sshll.u32 %s1830_s24, 4  ;;  %s1690_s8 = int_to_ptr.vmem [resolvable:$false] %s1689_s8 }
  0x54   : > { %s1691_s9 = scalar_lea.vmem %s1690_s8, 9216  ;;  %p1692_p5 = scmp.lt.s32.totalorder %s2001_s11, %s1690_s8 }
  0x55   : > { %p1687_p0 = pnand %p1685_p13, %p1671_p6  ;;  %p1693_p8 = scmp.lt.s32.totalorder %s1691_s9, %s1684_s23 }
  0x57   : > { %p1688_p2 = pneg %p1687_p0  ;;  %p1694_p12 = por %p1693_p8, %p1692_p5 }
  0x59   : > { %p1695_p1 = pnand %p1694_p12, %p1688_p2 }
  0x5b   : > { %1698 = shalt.err (!%p1695_p1)
}
  0x5c   : > { %s2280_s20 = smov 8   ;;  %s2281_s12 = smov 128  }
  0x5d   : > { %1539 = dma.hbm_to_vmem [thread:$0]  (!%p2007_p4), %s1999_s29, 4608, %s2001_s11, %s2011_s26, %s2281_s12, %s2281_s12, %s2280_s20  }
  0x5e   : > { %p2282_p6 = scmp.ne.s32.totalorder %s2273_s30, 0 }
  0x5f   : > { %s187_s10 = sand.u32 (!%p2282_p6), 1, %s1801_s16   ;;  %p2283_p10 = scmp.ne.s32.totalorder (!%p2282_p6), %s2269_s27, 0 }
  0x60   : > { %185 = sbr.rel (%p2282_p6) target bundleno = 421 (0x1a5), region = 32  ;;  %s188_s6 = scalar_lea.sflag (!%p2282_p6), [#allocation4], %s187_s10 }
  0x61   : > { %s2045_s15 = smul.u32 (!%p2282_p6), 288, %s187_s10 }
  0x63   : > { %s191_s5 = scalar_lea.vmem (!%p2282_p6), [#allocation3], %s2045_s15 }
  0x67   : > { %1772 = dma.done.wait (%p2283_p10), %s188_s6, 4608  }
  0x68   : > { %1774 = vsyncadd (%p2283_p10), %s188_s6, 4294962688  ;;  %p2284_p3 = scmp.ne.s32.totalorder %s2268_s25, 0 }
  0x6a   : > { %1776 = dma.done.wait (%p2284_p3), [#allocation7], 6144  }
  0x6b   : > { %1778 = vsyncadd (%p2284_p3), [#allocation7], 4294961152  ;;  %v237_v0 = vld [vmem:[#allocation6] sm:$0xff]  ;;  %v238_v1 = vld [vmem:[#allocation6 + $0x8] sm:$0xff]  ;;  %s1071_s25 = sshll.u32 %s1809_s18, 7  ;;  %s215_s29 = sand.u32 1, %s1789_s13  }
  0x6c   : > { %v433_v2 = vld [vmem:[#allocation6 + $0x80] sm:$0xff]  ;;  %v1377_v3 = vpack.c.bf16 %v238_v1, %v237_v0  ;;  %v434_v4 = vld [vmem:[#allocation6 + $0x88] sm:$0xff]  ;;  %v239_v5 = vld [vmem:[#allocation6 + $0x10] sm:$0xff]  ;;  %s2059_s27 = scalar_lea.vmem %s191_s5, %s1071_s25 [#allocation3]  ;;  %s1070_s4 = sshll.u32 %s215_s29, 7 }
  0x6d   : > { %v240_v6 = vld [vmem:[#allocation6 + $0x18] sm:$0xff]  ;;  %v1409_v7 = vpack.c.bf16 %v434_v4, %v433_v2  ;;  %v435_v9 = vld [vmem:[#allocation6 + $0x90] sm:$0xff]  ;;  %v241_v11 = vld [vmem:[#allocation6 + $0x20] sm:$0xff]  ;;  %s2140_s26 = scalar_lea.vmem [#allocation8], %s1070_s4  ;;  %s1108_s23 = sshll.u32 %s1809_s18, 4 }
  0x6e   : > { %v1381_v8 = vpack.c.bf16 %v240_v6, %v239_v5  ;;  %v436_v10 = vld [vmem:[#allocation6 + $0x98] sm:$0xff]  ;;  %1378 = vmatprep.subr.bf16.mxu1 %v1377_v3  ;;  %v242_v13 = vld [vmem:[#allocation6 + $0x28] sm:$0xff]  ;;  %v437_v14 = vld [vmem:[#allocation6 + $0xa0] sm:$0xff]  ;;  %s1109_s24 = sshll.u32 %s1813_s19, 5  ;;  %s957_s8 = sshll.u32 %s2140_s26, 4  ;;  %s2180_s8 = int_to_ptr.vmem [resolvable:$true] %s957_s8 }
  0x6f   : > { %v1413_v12 = vpack.c.bf16 %v436_v10, %v435_v9  ;;  %v438_v15 = vld [vmem:[#allocation6 + $0xa8] sm:$0xff]  ;;  %1410 = vmatprep.subr.bf16.mxu0 %v1409_v7  ;;  %1380 = vmatpush3.bf16.msra.mxu1 %v1377_v3  ;;  %v1385_v16 = vpack.c.bf16 %v242_v13, %v241_v11  ;;  %v243_v18 = vld [vmem:[#allocation6 + $0x30] sm:$0xff]  ;;  %v244_v19 = vld [vmem:[#allocation6 + $0x38] sm:$0xff]  ;;  %s954_s18 = sadd.s32 %s1109_s24, %s1108_s23  ;;  %s2188_s10 = scalar_lea.sflag [#allocation5], %s215_s29 }
  0x70   : > { %1412 = vmatpush3.bf16.msra.mxu0 %v1409_v7  ;;  %1382 = vmatprep.subr.bf16.mxu1 %v1381_v8  ;;  %v1417_v17 = vpack.c.bf16 %v438_v15, %v437_v14  ;;  %v439_v20 = vld [vmem:[#allocation6 + $0xb0] sm:$0xff]  ;;  %v440_v21 = vld [vmem:[#allocation6 + $0xb8] sm:$0xff]  ;;  %v1389_v22 = vpack.c.bf16 %v244_v19, %v243_v18  ;;  %v245_v24 = vld [vmem:[#allocation6 + $0x40] sm:$0xff]  ;;  %s1110_s19 = sshll.u32 %s954_s18, 7  ;;  %s1699_s15 = scalar_lea.vmem %s2180_s8, 2048 }
  0x71   : > { %1414 = vmatprep.subr.bf16.mxu0 %v1413_v12  ;;  %v1421_v23 = vpack.c.bf16 %v440_v21, %v439_v20  ;;  %v246_v25 = vld [vmem:[#allocation6 + $0x48] sm:$0xff]  ;;  %v221_v26 = vld [vmem:[%s2059_s27] sm:$0xff]  ;;  %v1073_v29 = vld [vmem:[%s2059_s27 + $0x10] sm:$0xff]  ;;  %s2178_s12 = scalar_lea.hbm %s2252_s3, %s1110_s19  ;;  %p1700_p4 = scmp.ne.s32.totalorder %s2180_s8, %s1699_s15 }
  0x72   : > { %v441_v27 = vld [vmem:[#allocation6 + $0xc0] sm:$0xff]  ;;  %v442_v28 = vld [vmem:[#allocation6 + $0xc8] sm:$0xff]  ;;  %1241 = vmatprep.mubr.f32.mxu1 %v221_v26  ;;  %1297 = vmatprep.mubr.f32.mxu0 %v1073_v29  ;;  %v1393_v30 = vpack.c.bf16 %v246_v25, %v245_v24  ;;  %v247_v32 = vld [vmem:[#allocation6 + $0x50] sm:$0xff]  ;;  %p2285_p7 = scmp.ne.s32.totalorder %s2270_s28, 0  ;;  %s1831_s6 = smov [#allocation8]  }
  0x73   : > { %1384 = vmatpush3.bf16.msra.mxu1 %v1381_v8  ;;  %v1425_v31 = vpack.c.bf16 %v442_v28, %v441_v27  ;;  %v248_v33 = vld [vmem:[#allocation6 + $0x58] sm:$0xff]  ;;  %v443_v34 = vld [vmem:[#allocation6 + $0xd0] sm:$0xff]  ;;  %v249_v38 = vld [vmem:[#allocation6 + $0x60] sm:$0xff]  ;;  %s1703_s5 = sshll.u32 %s1831_s6, 4  ;;  %s1704_s5 = int_to_ptr.vmem [resolvable:$false] %s1703_s5 }
  0x74   : > { %1416 = vmatpush3.bf16.msra.mxu0 %v1413_v12  ;;  %1386 = vmatprep.subr.bf16.mxu1 %v1385_v16  ;;  %v444_v35 = vld [vmem:[#allocation6 + $0xd8] sm:$0xff]  ;;  %v1397_v36 = vpack.c.bf16 %v248_v33, %v247_v32  ;;  %v250_v39 = vld [vmem:[#allocation6 + $0x68] sm:$0xff]  ;;  %v445_v40 = vld [vmem:[#allocation6 + $0xe0] sm:$0xff]  ;;  %p1701_p9 = pnand %p1700_p4, %p2285_p7  ;;  %s1705_s25 = scalar_lea.vmem %s1704_s5, 4096 }
  0x75   : > { %1418 = vmatprep.subr.bf16.mxu0 %v1417_v17  ;;  %v1429_v37 = vpack.c.bf16 %v444_v35, %v443_v34  ;;  %v446_v41 = vld [vmem:[#allocation6 + $0xe8] sm:$0xff]  ;;  %v1401_v42 = vpack.c.bf16 %v250_v39, %v249_v38  ;;  %v251_v44 = vld [vmem:[#allocation6 + $0x70] sm:$0xff]  ;;  %v252_v45 = vld [vmem:[#allocation6 + $0x78] sm:$0xff]  ;;  %p1706_p13 = scmp.lt.s32.totalorder %s2180_s8, %s1704_s5  ;;  %p1707_p0 = scmp.lt.s32.totalorder %s1705_s25, %s1699_s15 }
  0x76   : > { %v1433_v43 = vpack.c.bf16 %v446_v41, %v445_v40  ;;  %v447_v46 = vld [vmem:[#allocation6 + $0xf0] sm:$0xff]  ;;  %v448_v47 = vld [vmem:[#allocation6 + $0xf8] sm:$0xff]  ;;  %v1405_v48 = vpack.c.bf16 %v252_v45, %v251_v44  ;;  %v661_v50 = vld [vmem:[#allocation6 + $0x100] sm:$0xff]  ;;  %p1702_p11 = pneg %p1701_p9 }
  0x77   : > { %1388 = vmatpush3.bf16.msra.mxu1 %v1385_v16  ;;  %v1437_v49 = vpack.c.bf16 %v448_v47, %v447_v46  ;;  %v662_v51 = vld [vmem:[#allocation6 + $0x108] sm:$0xff]  ;;  %v663_v53 = vld [vmem:[#allocation6 + $0x110] sm:$0xff]  ;;  %v664_v54 = vld [vmem:[#allocation6 + $0x118] sm:$0xff]  ;;  %p1708_p2 = por %p1707_p0, %p1706_p13 }
  0x78   : > { %1420 = vmatpush3.bf16.msra.mxu0 %v1417_v17  ;;  %1390 = vmatprep.subr.bf16.mxu1 %v1389_v22  ;;  %v1441_v52 = vpack.c.bf16 %v662_v51, %v661_v50  ;;  %v222_v55 = vld [vmem:[%s2059_s27 + $0x8] sm:$0xff]  ;;  %v1074_v56 = vld [vmem:[%s2059_s27 + $0x18] sm:$0xff]  ;;  %v1445_v57 = vpack.c.bf16 %v664_v54, %v663_v53  ;;  %v2066_v58 = vld [vmem:[%s2059_s27 + $0x20] sm:$0xff] }
  0x79   : > { %1422 = vmatprep.subr.bf16.mxu0 %v1421_v23  ;;  %v665_v59 = vld [vmem:[#allocation6 + $0x120] sm:$0xff]  ;;  %v666_v60 = vld [vmem:[#allocation6 + $0x128] sm:$0xff]  ;;  %v2073_v63 = vld [vmem:[%s2059_s27 + $0x30] sm:$0xff]  ;;  %p1709_p5 = pnand %p1708_p2, %p1702_p11 }
  0x7a   : > { %v2069_v61 = vld [vmem:[%s2059_s27 + $0x28] sm:$0xff]  ;;  %v1449_v62 = vpack.c.bf16 %v666_v60, %v665_v59  ;;  %v667_v0 = vld [vmem:[#allocation6 + $0x130] sm:$0xff]  ;;  %v668_v1 = vld [vmem:[#allocation6 + $0x138] sm:$0xff] }
  0x7b   : > { %1392 = vmatpush3.bf16.msra.mxu1 %v1389_v22  ;;  %v2078_v2 = vld [vmem:[%s2059_s27 + $0x38] sm:$0xff]  ;;  %v1453_v3 = vpack.c.bf16 %v668_v1, %v667_v0  ;;  %v2083_v4 = vld [vmem:[%s2059_s27 + $0x40] sm:$0xff]  ;;  %v670_v6 = vld [vmem:[#allocation6 + $0x148] sm:$0xff] }
  0x7c   : > { %1424 = vmatpush3.bf16.msra.mxu0 %v1421_v23  ;;  %1394 = vmatprep.subr.bf16.mxu1 %v1393_v30  ;;  %v669_v5 = vld [vmem:[#allocation6 + $0x140] sm:$0xff]  ;;  %v2088_v7 = vld [vmem:[%s2059_s27 + $0x48] sm:$0xff]  ;;  %v2093_v9 = vld [vmem:[%s2059_s27 + $0x50] sm:$0xff] }
  0x7d   : > { %1426 = vmatprep.subr.bf16.mxu0 %v1425_v31  ;;  %v1457_v8 = vpack.c.bf16 %v670_v6, %v669_v5  ;;  %v671_v10 = vld [vmem:[#allocation6 + $0x150] sm:$0xff]  ;;  %v672_v11 = vld [vmem:[#allocation6 + $0x158] sm:$0xff]  ;;  %v1083_v14 = vld [vmem:[%s2059_s27 + $0x60] sm:$0xff] }
  0x7e   : > { %v1082_v12 = vld [vmem:[%s2059_s27 + $0x58] sm:$0xff]  ;;  %v1461_v13 = vpack.c.bf16 %v672_v11, %v671_v10  ;;  %v673_v15 = vld [vmem:[#allocation6 + $0x160] sm:$0xff]  ;;  %v674_v16 = vld [vmem:[#allocation6 + $0x168] sm:$0xff] }
  0x7f   : > { %1396 = vmatpush3.bf16.msra.mxu1 %v1393_v30  ;;  %v1084_v17 = vld [vmem:[%s2059_s27 + $0x68] sm:$0xff]  ;;  %v1465_v18 = vpack.c.bf16 %v674_v16, %v673_v15  ;;  %v1085_v19 = vld [vmem:[%s2059_s27 + $0x70] sm:$0xff]  ;;  %v676_v21 = vld [vmem:[#allocation6 + $0x178] sm:$0xff] }
  0x80   : > { %1428 = vmatpush3.bf16.msra.mxu0 %v1425_v31  ;;  %1398 = vmatprep.subr.bf16.mxu1 %v1397_v36  ;;  %v675_v20 = vld [vmem:[#allocation6 + $0x170] sm:$0xff]  ;;  %v1086_v22 = vld [vmem:[%s2059_s27 + $0x78] sm:$0xff]  ;;  %v1087_v24 = vld [vmem:[%s2059_s27 + $0x80] sm:$0xff] }
  0x81   : > { %1430 = vmatprep.subr.bf16.mxu0 %v1429_v37  ;;  %v1469_v23 = vpack.c.bf16 %v676_v21, %v675_v20  ;;  %v1088_v25 = vld [vmem:[%s2059_s27 + $0x88] sm:$0xff]  ;;  %v1104_v26 = vld [vmem:[%s2059_s27 + $0x90] sm:$0xff]  ;;  %v1105_v27 = vld [vmem:[%s2059_s27 + $0x98] sm:$0xff] }
  0x82   : > { %v2132_v60 = vld [vmem:[%s2251_s2] ss:$0 sm:$0xff] }
  0x83   : > { %1400 = vmatpush3.bf16.msra.mxu1 %v1397_v36 }
  0x84   : > { %1432 = vmatpush3.bf16.msra.mxu0 %v1429_v37  ;;  %1402 = vmatprep.subr.bf16.mxu1 %v1401_v42 }
  0x85   : > { %1434 = vmatprep.subr.bf16.mxu0 %v1433_v43 }
  0x87   : > { %1404 = vmatpush3.bf16.msra.mxu1 %v1401_v42 }
  0x88   : > { %1436 = vmatpush3.bf16.msra.mxu0 %v1433_v43  ;;  %1406 = vmatprep.subr.bf16.mxu1 %v1405_v48 }
  0x89   : > { %1438 = vmatprep.subr.bf16.mxu0 %v1437_v49 }
  0x8b   : > { %1408 = vmatpush3.bf16.msra.mxu1 %v1405_v48 }
  0x8c   : > { %1440 = vmatpush3.bf16.msra.mxu0 %v1437_v49  ;;  %1473 = vmatprep.subr.bf16.mxu1 %v1441_v52 }
  0x8d   : > { %1442 = vmatprep.subr.bf16.mxu0 %v1441_v52 }
  0x8e   : > { %1242 = vmatmul.mubr.f32.vlgmr.msra.gmra.mrb[0].mxu1 %v222_v55 }
  0x8f   : > { %1298 = vmatmul.mubr.f32.vlgmr.msra.gmra.mrb[0].mxu0 %v1074_v56  ;;  %1481 = vmatpush3.bf16.msra.mxu1 %v1441_v52 }
  0x90   : > { %1444 = vmatpush3.bf16.msra.mxu0 %v1441_v52  ;;  %1244 = vmatprep.mubr.f32.mxu1 %v1073_v29 }
  0x91   : > { %1300 = vmatprep.mubr.f32.mxu0 %v2066_v58  ;;  %1446 = vmatprep.subr.bf16.mxu0 %v1445_v57 }
  0x92   : > { %1245 = vmatmul.mubr.f32.gmra.mrb[2].mxu1 %v1074_v56  ;;  %1474 = vmatprep.subr.bf16.mxu1 %v1445_v57 }
  0x93   : > { %1301 = vmatmul.mubr.f32.gmra.mrb[2].mxu0 %v2069_v61  ;;  %1482 = vmatpush3.bf16.msra.mxu1 %v1445_v57 }
  0x94   : > { %1448 = vmatpush3.bf16.msra.mxu0 %v1445_v57  ;;  %1247 = vmatprep.mubr.f32.mxu1 %v2066_v58 }
  0x95   : > { %1303 = vmatprep.mubr.f32.mxu0 %v2073_v63  ;;  %1450 = vmatprep.subr.bf16.mxu0 %v1449_v62 }
  0x96   : > { %1248 = vmatmul.mubr.f32.gmra.mrb[4].mxu1 %v2069_v61  ;;  %1475 = vmatprep.subr.bf16.mxu1 %v1449_v62 }
  0x97   : > { %1304 = vmatmul.mubr.f32.gmra.mrb[4].mxu0 %v2078_v2  ;;  %1483 = vmatpush3.bf16.msra.mxu1 %v1449_v62 }
  0x98   : > { %1452 = vmatpush3.bf16.msra.mxu0 %v1449_v62  ;;  %1250 = vmatprep.mubr.f32.mxu1 %v2073_v63 }
  0x99   : > { %1306 = vmatprep.mubr.f32.mxu0 %v2083_v4  ;;  %1454 = vmatprep.subr.bf16.mxu0 %v1453_v3 }
  0x9a   : > { %1251 = vmatmul.mubr.f32.gmra.mrb[6].mxu1 %v2078_v2  ;;  %1476 = vmatprep.subr.bf16.mxu1 %v1453_v3 }
  0x9b   : > { %1307 = vmatmul.mubr.f32.gmra.mrb[6].mxu0 %v2088_v7  ;;  %1484 = vmatpush3.bf16.msra.mxu1 %v1453_v3 }
  0x9c   : > { %1456 = vmatpush3.bf16.msra.mxu0 %v1453_v3  ;;  %1253 = vmatprep.mubr.f32.mxu1 %v2083_v4 }
  0x9d   : > { %1309 = vmatprep.mubr.f32.mxu0 %v2093_v9  ;;  %1458 = vmatprep.subr.bf16.mxu0 %v1457_v8 }
  0x9e   : > { %1254 = vmatmul.mubr.f32.gmra.mrb[8].mxu1 %v2088_v7  ;;  %1477 = vmatprep.subr.bf16.mxu1 %v1457_v8 }
  0x9f   : > { %1310 = vmatmul.mubr.f32.gmra.mrb[8].mxu0 %v1082_v12  ;;  %1485 = vmatpush3.bf16.msra.mxu1 %v1457_v8 }
  0xa0   : > { %1460 = vmatpush3.bf16.msra.mxu0 %v1457_v8  ;;  %1256 = vmatprep.mubr.f32.mxu1 %v2093_v9 }
  0xa1   : > { %1312 = vmatprep.mubr.f32.mxu0 %v1083_v14  ;;  %1462 = vmatprep.subr.bf16.mxu0 %v1461_v13 }
  0xa2   : > { %1257 = vmatmul.mubr.f32.gmra.mrb[10].mxu1 %v1082_v12  ;;  %1478 = vmatprep.subr.bf16.mxu1 %v1461_v13 }
  0xa3   : > { %1313 = vmatmul.mubr.f32.gmra.mrb[10].mxu0 %v1084_v17  ;;  %1486 = vmatpush3.bf16.msra.mxu1 %v1461_v13 }
  0xa4   : > { %1464 = vmatpush3.bf16.msra.mxu0 %v1461_v13  ;;  %1259 = vmatprep.mubr.f32.mxu1 %v1083_v14 }
  0xa5   : > { %1315 = vmatprep.mubr.f32.mxu0 %v1085_v19  ;;  %1466 = vmatprep.subr.bf16.mxu0 %v1465_v18 }
  0xa6   : > { %1260 = vmatmul.mubr.f32.gmra.mrb[12].mxu1 %v1084_v17  ;;  %1479 = vmatprep.subr.bf16.mxu1 %v1465_v18 }
  0xa7   : > { %1316 = vmatmul.mubr.f32.gmra.mrb[12].mxu0 %v1086_v22  ;;  %1487 = vmatpush3.bf16.msra.mxu1 %v1465_v18 }
  0xa8   : > { %1468 = vmatpush3.bf16.msra.mxu0 %v1465_v18  ;;  %1262 = vmatprep.mubr.f32.mxu1 %v1085_v19 }
  0xa9   : > { %1318 = vmatprep.mubr.f32.mxu0 %v1087_v24  ;;  %1470 = vmatprep.subr.bf16.mxu0 %v1469_v23 }
  0xaa   : > { %1263 = vmatmul.mubr.f32.gmra.mrb[14].mxu1 %v1086_v22  ;;  %1480 = vmatprep.subr.bf16.mxu1 %v1469_v23 }
  0xab   : > { %1319 = vmatmul.mubr.f32.gmra.mrb[14].mxu0 %v1088_v25  ;;  %1488 = vmatpush3.bf16.msra.mxu1 %v1469_v23 }
  0xac   : > { %1472 = vmatpush3.bf16.msra.mxu0 %v1469_v23  ;;  %1353 = vmatprep.mubr.f32.mxu0 %v2066_v58 }
  0xad   : > { %1365 = vmatprep.mubr.f32.mxu1 %v1083_v14 }
  0xae   : > { %1366 = vmatmul.mubr.f32.vlgmr.msra.gmra.mrb[16].mxu1 %v1084_v17 }
  0xaf   : > { %1354 = vmatmul.mubr.f32.vlgmr.msra.gmra.mrb[0].mxu0 %v2069_v61  ;;  %1368 = vmatprep.mubr.f32.mxu1 %v1085_v19 }
  0xb0   : > { %1356 = vmatprep.mubr.f32.mxu0 %v2073_v63 }
  0xb2   : > { %1369 = vmatmul.mubr.f32.gmra.mrb[18].mxu1 %v1086_v22 }
  0xb3   : > { %1357 = vmatmul.mubr.f32.gmra.mrb[2].mxu0 %v2078_v2  ;;  %1371 = vmatprep.mubr.f32.mxu1 %v1087_v24 }
  0xb4   : > { %1359 = vmatprep.mubr.f32.mxu0 %v2083_v4 }
  0xb6   : > { %1372 = vmatmul.mubr.f32.gmra.mrb[20].mxu1 %v1088_v25 }
  0xb7   : > { %1360 = vmatmul.mubr.f32.gmra.mrb[4].mxu0 %v2088_v7  ;;  %1374 = vmatprep.mubr.f32.mxu1 %v1104_v26 }
  0xb8   : > { %1362 = vmatprep.mubr.f32.mxu0 %v2093_v9 }
  0xba   : > { %1375 = vmatmul.mubr.f32.gmra.mrb[22].mxu1 %v1105_v27 }
  0xbb   : > { %1363 = vmatmul.mubr.f32.gmra.mrb[6].mxu0 %v1082_v12 }
 0x161   : > { %v1243_v28 = vpop.f32.mrb[0].mxu1 }
 0x162   : > { %v319_v29 = vpop.f32.mrb[1].mxu1 }
 0x165   : > { %v1246_v30 = vpop.f32.mrb[2].mxu1 }
 0x166   : > { %v329_v31 = vpop.f32.mrb[3].mxu1 }
 0x169   : > { %v2116_v32 = vpop.f32.mrb[4].mxu1 }
 0x16a   : > { %v2118_v33 = vpop.f32.mrb[5].mxu1 }
 0x16d   : > { %v2120_v34 = vpop.f32.mrb[6].mxu1 }
 0x16e   : > { %v2122_v35 = vpop.f32.mrb[7].mxu1 }
 0x171   : > { %v1255_v36 = vpop.f32.mrb[8].mxu1 }
 0x172   : > { %v1311_v37 = vpop.f32.mrb[8].mxu0  ;;  %v359_v38 = vpop.f32.mrb[9].mxu1 }
 0x173   : > { %v619_v39 = vadd.f32 %v1311_v37, %v1255_v36  ;;  %v555_v40 = vpop.f32.mrb[9].mxu0 }
 0x174   : > { %v618_v41 = vadd.f32 %v555_v40, %v359_v38 }
 0x175   : > { %v1258_v42 = vpop.f32.mrb[10].mxu1 }
 0x176   : > { %v1314_v43 = vpop.f32.mrb[10].mxu0  ;;  %v369_v44 = vpop.f32.mrb[11].mxu1 }
 0x177   : > { %v621_v45 = vadd.f32 %v1314_v43, %v1258_v42  ;;  %v565_v46 = vpop.f32.mrb[11].mxu0 }
 0x178   : > { %v620_v47 = vadd.f32 %v565_v46, %v369_v44 }
 0x179   : > { %v1261_v48 = vpop.f32.mrb[12].mxu1 }
 0x17a   : > { %v1317_v49 = vpop.f32.mrb[12].mxu0  ;;  %v379_v50 = vpop.f32.mrb[13].mxu1 }
 0x17b   : > { %v623_v51 = vadd.f32 %v1317_v49, %v1261_v48  ;;  %v575_v52 = vpop.f32.mrb[13].mxu0 }
 0x17c   : > { %v622_v53 = vadd.f32 %v575_v52, %v379_v50 }
 0x17d   : > { %v1264_v54 = vpop.f32.mrb[14].mxu1 }
 0x17e   : > { %v1320_v55 = vpop.f32.mrb[14].mxu0  ;;  %v389_v56 = vpop.f32.mrb[15].mxu1 }
 0x17f   : > { %v2124_v57 = vadd.f32 %v1320_v55, %v1264_v54  ;;  %v585_v58 = vpop.f32.mrb[15].mxu0 }
 0x180   : > { %v2127_v59 = vadd.f32 %v585_v58, %v389_v56 }
 0x181   : > { %v1367_v61 = vpop.f32.mrb[16].mxu1 }
 0x182   : > { %v1355_v62 = vpop.f32.mrb[0].mxu0  ;;  %v847_v63 = vadd.f32 %v1367_v61, %v619_v39  ;;  %v783_v0 = vpop.f32.mrb[17].mxu1 }
 0x183   : > { %v1489_v1 = vadd.f32 %v1355_v62, %v1243_v28  ;;  %v743_v2 = vpop.f32.mrb[1].mxu0  ;;  %v846_v3 = vadd.f32 %v783_v0, %v618_v41 }
 0x184   : > { %v902_v4 = vadd.f32 %v2132_v60, %v847_v63  ;;  %v1490_v5 = vadd.f32 %v743_v2, %v319_v29 }
 0x185   : > { %v894_v6 = vadd.f32 %v1489_v1, %v2132_v60  ;;  %v901_v7 = vadd.f32 %v2132_v60, %v846_v3  ;;  %v1370_v8 = vpop.f32.mrb[18].mxu1 }
 0x186   : > { %v918_v9 = vmax.f32 %v902_v4, 0.0  ;;  %v893_v10 = vadd.f32 %v1490_v5, %v2132_v60  ;;  %v1358_v11 = vpop.f32.mrb[2].mxu0  ;;  %v849_v12 = vadd.f32 %v1370_v8, %v621_v45  ;;  %v793_v13 = vpop.f32.mrb[19].mxu1 }
 0x187   : > { %v910_v14 = vmax.f32 %v894_v6, 0.0  ;;  %v917_v15 = vmax.f32 %v901_v7, 0.0  ;;  %v1491_v16 = vadd.f32 %v1358_v11, %v1246_v30  ;;  %v753_v17 = vpop.f32.mrb[3].mxu0  ;;  %v848_v18 = vadd.f32 %v793_v13, %v620_v47 }
 0x188   : > { %934 = vst [vmem:[%s2140_s26 + $0x48] sm:$0xff] %v918_v9  ;;  %v909_v19 = vmax.f32 %v893_v10, 0.0  ;;  %v904_v20 = vadd.f32 %v2132_v60, %v849_v12  ;;  %v1492_v21 = vadd.f32 %v753_v17, %v329_v31 }
 0x189   : > { %926 = vst [vmem:[%s2140_s26 + $0x8] sm:$0xff] %v910_v14  ;;  %933 = vst [vmem:[%s2140_s26 + $0x40] sm:$0xff] %v917_v15  ;;  %v896_v22 = vadd.f32 %v1491_v16, %v2132_v60  ;;  %v903_v23 = vadd.f32 %v2132_v60, %v848_v18  ;;  %v1373_v24 = vpop.f32.mrb[20].mxu1 }
 0x18a   : > { %925 = vst [vmem:[%s2140_s26] sm:$0xff] %v909_v19  ;;  %v920_v25 = vmax.f32 %v904_v20, 0.0  ;;  %v895_v26 = vadd.f32 %v1492_v21, %v2132_v60  ;;  %v1361_v27 = vpop.f32.mrb[4].mxu0  ;;  %v851_v28 = vadd.f32 %v1373_v24, %v623_v51  ;;  %v803_v29 = vpop.f32.mrb[21].mxu1 }
 0x18b   : > { %v912_v30 = vmax.f32 %v896_v22, 0.0  ;;  %v919_v31 = vmax.f32 %v903_v23, 0.0  ;;  %v1493_v36 = vadd.f32 %v1361_v27, %v2116_v32  ;;  %v763_v37 = vpop.f32.mrb[5].mxu0  ;;  %v850_v38 = vadd.f32 %v803_v29, %v622_v53 }
 0x18c   : > { %936 = vst [vmem:[%s2140_s26 + $0x58] sm:$0xff] %v920_v25  ;;  %v911_v39 = vmax.f32 %v895_v26, 0.0  ;;  %v906_v40 = vadd.f32 %v2132_v60, %v851_v28  ;;  %v1494_v41 = vadd.f32 %v763_v37, %v2118_v33 }
 0x18d   : > { %928 = vst [vmem:[%s2140_s26 + $0x18] sm:$0xff] %v912_v30  ;;  %935 = vst [vmem:[%s2140_s26 + $0x50] sm:$0xff] %v919_v31  ;;  %v898_v42 = vadd.f32 %v1493_v36, %v2132_v60  ;;  %v905_v43 = vadd.f32 %v2132_v60, %v850_v38  ;;  %v1376_v44 = vpop.f32.mrb[22].mxu1 }
 0x18e   : > { %927 = vst [vmem:[%s2140_s26 + $0x10] sm:$0xff] %v911_v39  ;;  %v922_v32 = vmax.f32 %v906_v40, 0.0  ;;  %v897_v45 = vadd.f32 %v1494_v41, %v2132_v60  ;;  %v1364_v46 = vpop.f32.mrb[6].mxu0  ;;  %v853_v47 = vadd.f32 %v1376_v44, %v2124_v57  ;;  %v813_v33 = vpop.f32.mrb[23].mxu1 }
 0x18f   : > { %v914_v48 = vmax.f32 %v898_v42, 0.0  ;;  %v921_v49 = vmax.f32 %v905_v43, 0.0  ;;  %v1495_v50 = vadd.f32 %v1364_v46, %v2120_v34  ;;  %v773_v51 = vpop.f32.mrb[7].mxu0  ;;  %v852_v52 = vadd.f32 %v813_v33, %v2127_v59 }
 0x190   : > { %938 = vst [vmem:[%s2140_s26 + $0x68] sm:$0xff] %v922_v32  ;;  %v913_v53 = vmax.f32 %v897_v45, 0.0  ;;  %v908_v54 = vadd.f32 %v2132_v60, %v853_v47  ;;  %v1496_v55 = vadd.f32 %v773_v51, %v2122_v35 }
 0x191   : > { %930 = vst [vmem:[%s2140_s26 + $0x28] sm:$0xff] %v914_v48  ;;  %937 = vst [vmem:[%s2140_s26 + $0x60] sm:$0xff] %v921_v49  ;;  %v900_v34 = vadd.f32 %v1495_v50, %v2132_v60  ;;  %v907_v56 = vadd.f32 %v2132_v60, %v852_v52 }
 0x192   : > { %929 = vst [vmem:[%s2140_s26 + $0x20] sm:$0xff] %v913_v53  ;;  %v924_v57 = vmax.f32 %v908_v54, 0.0  ;;  %v899_v58 = vadd.f32 %v1496_v55, %v2132_v60 }
 0x193   : > { %v916_v59 = vmax.f32 %v900_v34, 0.0  ;;  %v923_v61 = vmax.f32 %v907_v56, 0.0 }
 0x194   : > { %940 = vst [vmem:[%s2140_s26 + $0x78] sm:$0xff] %v924_v57  ;;  %v915_v35 = vmax.f32 %v899_v58, 0.0 }
 0x195   : > { %932 = vst [vmem:[%s2140_s26 + $0x38] sm:$0xff] %v916_v59  ;;  %939 = vst [vmem:[%s2140_s26 + $0x70] sm:$0xff] %v923_v61 }
 0x196   : > { %931 = vst [vmem:[%s2140_s26 + $0x30] sm:$0xff] %v915_v35 }
 0x197   : > { %1712 = shalt.err (!%p1709_p5)
}
 0x198   : > { %s1713_s27 = scalar_lea.hbm %s2178_s12, 2048  ;;  %s1717_s11 = scalar_lea.hbm %s2252_s3, 8192 }
 0x199   : > { %p1714_p8 = scmp.ne.s32.totalorder %s2178_s12, %s1713_s27  ;;  %p1718_p6 = scmp.lt.u32.totalorder %s2178_s12, %s2252_s3 }
 0x19a   : > { %p1719_p10 = scmp.lt.u32.totalorder %s1717_s11, %s1713_s27  ;;  %p1721_p4 = scmp.lt.u32.totalorder %s1713_s27, %s2178_s12 }
 0x19b   : > { %p1715_p12 = pnand %p1714_p8, %p2285_p7 }
 0x19c   : > { %p1720_p3 = por %p1719_p10, %p1718_p6 }
 0x19d   : > { %p1716_p1 = pneg %p1715_p12 }
 0x19e   : > { %p1722_p9 = por %p1721_p4, %p1720_p3 }
 0x1a0   : > { %p1723_p11 = pnand %p1722_p9, %p1716_p1 }
 0x1a2   : > { %1726 = shalt.err (!%p1723_p11)
}
 0x1a3   : > { %s1832_s23 = smov 128   ;;  %s1833_s24 = smov 8  }
 0x1a4   : > { %1530 = dma.vmem_to_hbm [thread:$0]  (%p2285_p7), %s2180_s8, 2048, %s2178_s12, %s2188_s10, %s1832_s23, %s1832_s23, %s1833_s24  }
 0x1a5 PF: > { %s2286_s18 = sld [smem:[#allocation12_spill]]  ;;  %s2287_s19 = sld [smem:[#allocation14_spill]] }
 0x1a6   : > { %p1547_p13 = scmp.ge.s32.totalorder %s1825_s22, 2 }
 0x1ab   : > { %s972_s9 = sand.u32 1, %s2286_s18   ;;  %p2288_p0 = scmp.ne.s32.totalorder %s2287_s19, 0 }
 0x1ac   : > { %s973_s20 = scalar_lea.sflag [#allocation5], %s972_s9 }
 0x1ad   : > { %p1541_p2 = pnand %p1547_p13, %p2288_p0 }
 0x1af   : > { %1780 = dma.done.wait (!%p1541_p2), %s973_s20, 2048  }
 0x1b0   : > { %1782 = vsyncadd (!%p1541_p2), %s973_s20, 4294965248  ;;  %s20_s22 = sadd.s32 1, %s1825_s22   ;;  %s2289_s18 = sld [smem:[#allocation13_spill]] }
 0x1b1   : > { %p17_p5 = scmp.ge.s32.totalorder %s20_s22, 6   ;;  %s2290_s20 = sld [smem:[#allocation15_spill]] }
 0x1b2   : > { %s2291_s28 = sld [smem:[#allocation16_spill]]  ;;  %s2292_s12 = smov %s1789_s13 }
 0x1b3   : > { %s2293_s13 = smov %s1793_s14  ;;  %s2294_s14 = smov %s1994_s1 }
 0x1b4   : > { %s2295_s15 = smov %s1801_s16  ;;  %s2296_s16 = smov %s1805_s17 }
 0x1b5   : > { %s2297_s17 = smov %s1989_s7  ;;  %s2298_s19 = smov %s1821_s21 }
 0x1b6   :  { %19 = sbr.rel (!%p17_p5) target bundleno = 12 (0xc), region = 86 }
 0x1b8   : > { %s2299_s21 = smov %s2291_s28 }
 0x1bd   :  { %978 = vsyncpa [#allocation4], 1 }
 0x1be   :  { %980 = vsyncpa [#allocation4 + $0x1], 1 }
 0x1bf   :  { %981 = vsyncpa [#allocation7], 1 }
 0x1c0   :  { %982 = vsyncpa [#allocation5], 1 }
 0x1c1   :  { %984 = vsyncpa [#allocation5 + $0x1], 1 }

</bundles_post_ra>
